<compile_context>
chip_gen: v5e
topology: v5e:2x2
jax: 0.10.0
libtpu: 0.0.40
codegen_flags: <defaults>
</compile_context>

<pallas_src>
import functools

import jax
import jax.numpy as jnp
from jax import lax
from jax.experimental import pallas as pl
from jax.experimental.pallas import tpu as pltpu


def _round_up(x, m):
    return ((x + m - 1) // m) * m


def _largest_aligned_divisor(dim, align, cap):
    """Largest multiple of `align` that divides `dim` and is <= cap.

    `dim` must itself be a multiple of `align`.  Used for the N / K axes so the
    padded weight footprint never grows past the 128-rounded dims.
    """
    cap = max(align, cap)
    if dim <= cap:
        return dim
    best = align
    t = align
    while t <= cap:
        if dim % t == 0:
            best = t
        t += align
    return best


def _pad2(a, rows, cols):
    pr, pc = rows - a.shape[0], cols - a.shape[1]
    if pr == 0 and pc == 0:
        return a
    return jnp.pad(a, ((0, pr), (0, pc)))


# Contract on axis 1 of both operands: (tm, tk) x (tn, tk) -> (tm, tn).
# This is F.linear's x @ W^T without ever transposing W in VMEM.
_TRANS_B = (((1,), (1,)), ((), ()))


def _noisy_linear_kernel(x_ref, wmu_ref, wsig_ref, weps_ref, b_ref,
                         o_ref, acc_ref, *, mxu_dtype):
    """Training path: W_eff = mu + sigma * eps, y = x @ W_eff^T + b_eff."""
    k = pl.program_id(2)

    @pl.when(k == 0)
    def _():
        acc_ref[...] = jnp.zeros_like(acc_ref)

    # Noise FMA in f32 regardless of the weight *storage* dtype (bf16-stored
    # weights are cast up here).  VPU work, hidden under the weight DMA.
    w_eff = (wmu_ref[...].astype(jnp.float32)
             + wsig_ref[...].astype(jnp.float32)
             * weps_ref[...].astype(jnp.float32))                   # (tn, tk)

    acc_ref[...] += lax.dot_general(
        x_ref[...].astype(mxu_dtype), w_eff.astype(mxu_dtype),
        dimension_numbers=_TRANS_B,
        preferred_element_type=jnp.float32)

    @pl.when(k == pl.num_programs(2) - 1)
    def _():
        o_ref[...] = (acc_ref[...] + b_ref[...]).astype(o_ref.dtype)


def _mu_linear_kernel(x_ref, wmu_ref, b_ref, o_ref, acc_ref, *, mxu_dtype):
    """Eval path: mu-only weights (1/3 of the training weight DMA traffic)."""
    k = pl.program_id(2)

    @pl.when(k == 0)
    def _():
        acc_ref[...] = jnp.zeros_like(acc_ref)

    acc_ref[...] += lax.dot_general(
        x_ref[...].astype(mxu_dtype), wmu_ref[...].astype(mxu_dtype),
        dimension_numbers=_TRANS_B,
        preferred_element_type=jnp.float32)

    @pl.when(k == pl.num_programs(2) - 1)
    def _():
        o_ref[...] = (acc_ref[...] + b_ref[...]).astype(o_ref.dtype)


def noisy_linear(x, weight_mu, weight_sigma, weight_epsilon,
                 bias_mu, bias_sigma, bias_epsilon, training=True,
                 *, mxu_dtype=jnp.float32, tm=512, tn=512, tk=1024):
    """Pallas-backed NoisyLinear forward.

    x:        (B, in_features) float32
    weight_*: (out_features, in_features) PyTorch layout.  MAY already be
              padded to 128-multiples and/or stored as bf16 (see
              pad_noisy_linear_params); in that case no per-call weight copy
              is made.
    bias_*:   (out_features,) float32 -- bias_mu defines the logical
              out_features.
    returns:  (B, out_features) float32
    """
    B, K = x.shape
    N = bias_mu.shape[0]

    Bp_min = _round_up(B, 8)
    Np = _round_up(N, 128)
    Kp = _round_up(K, 128)

    # M axis: round the batch up to the tile (x traffic is cheap; fewer M
    #   tiles -> fewer re-reads of the weight streams).
    # N / K axes: the tile must DIVIDE the 128-rounded dim so weight padding
    #   never exceeds the 128-rounded footprint.
    tm = max(8, (min(tm, Bp_min) // 8) * 8)
    Bp = _round_up(B, tm)
    tn = _largest_aligned_divisor(Np, 128, tn)
    tk = _largest_aligned_divisor(Kp, 128, tk)

    # Effective bias: one tiny XLA FMA in the wrapper, single (1, Np) row DMA.
    bias = (bias_mu + bias_sigma * bias_epsilon) if training else bias_mu
    bias2 = _pad2(bias.astype(jnp.float32).reshape(1, N), 1, Np)
    xp = _pad2(x, Bp, Kp)

    def _prep_w(w):
        # Structural no-op when the params were pre-padded once via
        # pad_noisy_linear_params() or the layer dims are 128-multiples.
        return _pad2(w, Np, Kp)

    x_spec = pl.BlockSpec((tm, tk), lambda i, j, k: (i, k))
    w_spec = pl.BlockSpec((tn, tk), lambda i, j, k: (j, k))
    b_spec = pl.BlockSpec((1, tn), lambda i, j, k: (0, j))
    o_spec = pl.BlockSpec((tm, tn), lambda i, j, k: (i, j))

    if training:
        kernel = functools.partial(_noisy_linear_kernel, mxu_dtype=mxu_dtype)
        operands = (xp, _prep_w(weight_mu), _prep_w(weight_sigma),
                    _prep_w(weight_epsilon), bias2)
        in_specs = [x_spec, w_spec, w_spec, w_spec, b_spec]
        n_w = 3
    else:
        kernel = functools.partial(_mu_linear_kernel, mxu_dtype=mxu_dtype)
        operands = (xp, _prep_w(weight_mu), bias2)
        in_specs = [x_spec, w_spec, b_spec]
        n_w = 1

    # VMEM budget: double-buffered inputs/outputs + f32 accumulator, 1.5x
    # headroom, capped at v7x's 64 MiB physical VMEM per TensorCore.
    w_bytes = jnp.dtype(weight_mu.dtype).itemsize
    x_bytes = jnp.dtype(x.dtype).itemsize
    need = (2 * (n_w * tn * tk * w_bytes + tm * tk * x_bytes
                 + tn * 4 + tm * tn * 4)
            + tm * tn * 4)
    vmem_limit = int(min(64 * 1024 * 1024,
                         max(32 * 1024 * 1024, need * 3 // 2)))

    out = pl.pallas_call(
        kernel,
        out_shape=jax.ShapeDtypeStruct((Bp, Np), jnp.float32),
        grid_spec=pltpu.PrefetchScalarGridSpec(
            num_scalar_prefetch=0,
            # K (reduction) MUST stay the innermost axis: the accumulator
            # init/writeback assumes the output block index is constant
            # across it.
            grid=(Bp // tm, Np // tn, Kp // tk),
            in_specs=in_specs,
            out_specs=o_spec,
            scratch_shapes=[pltpu.VMEM((tm, tn), jnp.float32)]),
        compiler_params=pltpu.CompilerParams(
            dimension_semantics=("parallel", "parallel", "arbitrary"),
            vmem_limit_bytes=vmem_limit),
    )(*operands)

    return out[:B, :N]


def pad_noisy_linear_params(weight_mu, weight_sigma, weight_epsilon,
                            *, storage_dtype=None):
    """One-time (per reset_noise / optimizer step) weight preparation.

    Pads the (out, in) weight arrays to 128-multiples and optionally casts
    them to a narrower storage dtype (e.g. jnp.bfloat16), so the per-call
    forward performs zero weight-sized HBM copies and streams half the bytes.
    The noise FMA / accumulation inside the kernel stay f32.
    """
    N, K = weight_mu.shape
    Np, Kp = _round_up(N, 128), _round_up(K, 128)

    def prep(w):
        w = _pad2(w, Np, Kp)
        if storage_dtype is not None:
            w = w.astype(storage_dtype)
        return w

    return prep(weight_mu), prep(weight_sigma), prep(weight_epsilon)


def init_noisy_linear_params(key, in_features, out_features, sigma_init=0.017):
    """Deterministic re-implementation of reset_parameters() + reset_noise()."""
    k_wmu, k_bmu, k_weps, k_beps = jax.random.split(key, 4)
    mu_range = 1.0 / (in_features ** 0.5)
    weight_mu = jax.random.uniform(k_wmu, (out_features, in_features),
                                   minval=-mu_range, maxval=mu_range,
                                   dtype=jnp.float32)
    weight_sigma = jnp.full((out_features, in_features),
                            sigma_init / (in_features ** 0.5), dtype=jnp.float32)
    bias_mu = jax.random.uniform(k_bmu, (out_features,),
                                 minval=-mu_range, maxval=mu_range,
                                 dtype=jnp.float32)
    bias_sigma = jnp.full((out_features,),
                          sigma_init / (out_features ** 0.5), dtype=jnp.float32)
    weight_epsilon = jax.random.normal(k_weps, (out_features, in_features),
                                       dtype=jnp.float32)
    bias_epsilon = jax.random.normal(k_beps, (out_features,), dtype=jnp.float32)
    return (weight_mu, weight_sigma, weight_epsilon,
            bias_mu, bias_sigma, bias_epsilon)


if __name__ == "__main__":
    key = jax.random.PRNGKey(0)
    k_params, k_x, k_params2, k_x2 = jax.random.split(key, 4)

    # ---- Small RL-sized layer (8 x 32 -> 32): ragged dims, weights padded
    #      ONCE at init (no per-call weight copies). ------------------------
    B, IN, OUT = 8, 32, 32
    (wmu, wsig, weps, bmu, bsig, beps) = init_noisy_linear_params(k_params, IN, OUT)
    wmu_p, wsig_p, weps_p = pad_noisy_linear_params(wmu, wsig, weps)
    x = jax.random.normal(k_x, (B, IN), dtype=jnp.float32)

    y_train = jax.block_until_ready(
        noisy_linear(x, wmu_p, wsig_p, weps_p, bmu, bsig, beps, training=True))
    y_eval = jax.block_until_ready(
        noisy_linear(x, wmu_p, wsig_p, weps_p, bmu, bsig, beps, training=False))

    w_eff = wmu + wsig * weps
    b_eff = bmu + bsig * beps
    ref_train = jnp.dot(x, w_eff.T, precision=lax.Precision.HIGHEST) + b_eff
    ref_eval = jnp.dot(x, wmu.T, precision=lax.Precision.HIGHEST) + bmu
    assert y_train.shape == (B, OUT) and y_eval.shape == (B, OUT)
    assert jnp.allclose(y_train, ref_train, atol=1e-5, rtol=1e-5)
    assert jnp.allclose(y_eval, ref_eval, atol=1e-5, rtol=1e-5)

    # ---- Larger layer (64 x 640 -> 384): dims are already 128-multiples, so
    #      padding is a structural no-op and the default tile caps give a
    #      single grid point (each weight byte streamed exactly once). -------
    B2, IN2, OUT2 = 64, 640, 384
    (wmu2, wsig2, weps2, bmu2, bsig2, beps2) = init_noisy_linear_params(
        k_params2, IN2, OUT2)
    x2 = jax.random.normal(k_x2, (B2, IN2), dtype=jnp.float32)

    w2_eff = wmu2 + wsig2 * weps2
    ref2 = (jnp.dot(x2, w2_eff.T, precision=lax.Precision.HIGHEST)
            + (bmu2 + bsig2 * beps2))

    y2 = jax.block_until_ready(
        noisy_linear(x2, wmu2, wsig2, weps2, bmu2, bsig2, beps2, training=True))
    assert y2.shape == (B2, OUT2)
    assert jnp.allclose(y2, ref2, atol=1e-3, rtol=1e-3)

    # ---- Same layer with small tile caps to exercise the tiled (M, N, K)
    #      grid and the f32 accumulator across K steps. ---------------------
    y2_tiled = jax.block_until_ready(
        noisy_linear(x2, wmu2, wsig2, weps2, bmu2, bsig2, beps2,
                     training=True, tm=64, tn=128, tk=256))
    assert jnp.allclose(y2_tiled, ref2, atol=1e-3, rtol=1e-3)

    # ---- bf16 weight STORAGE (half the weight HBM bytes).  Noise FMA, MXU
    #      operands and accumulation remain f32, so the sigma*eps perturbation
    #      survives; reference uses the same bf16-rounded parameters. --------
    wmu2_b, wsig2_b, weps2_b = pad_noisy_linear_params(
        wmu2, wsig2, weps2, storage_dtype=jnp.bfloat16)
    w2_eff_b = (wmu2_b.astype(jnp.float32)
                + wsig2_b.astype(jnp.float32)
                * weps2_b.astype(jnp.float32))[:OUT2, :IN2]
    ref2_b = (jnp.dot(x2, w2_eff_b.T, precision=lax.Precision.HIGHEST)
              + (bmu2 + bsig2 * beps2))
    y2_b = jax.block_until_ready(
        noisy_linear(x2, wmu2_b, wsig2_b, weps2_b, bmu2, bsig2, beps2,
                     training=True))
    assert jnp.allclose(y2_b, ref2_b, atol=1e-3, rtol=1e-3)

    print("KERNEL_OK")
</pallas_src>

<mosaic_0001>
module attributes {stable_mosaic.version = 11 : i64} {
  func.func @_noisy_linear_kernel(%arg0: i32, %arg1: i32, %arg2: i32, %arg3: memref<8x128xf32, #tpu.memory_space<vmem>>, %arg4: memref<128x128xf32, #tpu.memory_space<vmem>>, %arg5: memref<128x128xf32, #tpu.memory_space<vmem>>, %arg6: memref<128x128xf32, #tpu.memory_space<vmem>>, %arg7: memref<1x128xf32, #tpu.memory_space<vmem>>, %arg8: memref<8x128xf32, #tpu.memory_space<vmem>>, %arg9: memref<8x128xf32, #tpu.memory_space<vmem>>) attributes {dimension_semantics = [#tpu.dimension_semantics<parallel>, #tpu.dimension_semantics<parallel>, #tpu.dimension_semantics<arbitrary>], iteration_bounds = array<i64: 1, 1, 1>, scalar_prefetch = 0 : i64, scratch_operands = 1 : i64, tpu.core_type = #tpu.core_type<tc>, window_params = [{transform_indices = @transform_0, window_bounds = array<i64: 8, 128>}, {transform_indices = @transform_1, window_bounds = array<i64: 128, 128>}, {transform_indices = @transform_2, window_bounds = array<i64: 128, 128>}, {transform_indices = @transform_3, window_bounds = array<i64: 128, 128>}, {transform_indices = @transform_4, window_bounds = array<i64: 1, 128>}, {transform_indices = @transform_5, window_bounds = array<i64: 8, 128>}]} {
    %c0_i32 = arith.constant 0 : i32
    %0 = arith.cmpi eq, %arg2, %c0_i32 : i32
    %1 = arith.extui %0 : i1 to i32
    %c0_i32_0 = arith.constant 0 : i32
    %2 = arith.cmpi ne, %1, %c0_i32_0 : i32
    scf.if %2 {
      %cst_14 = arith.constant 0.000000e+00 : f32
      %16 = vector.broadcast %cst_14 : f32 to vector<8x128xf32>
      %c0_15 = arith.constant 0 : index
      %c0_16 = arith.constant 0 : index
      %17 = vector.load %arg9[%c0_15, %c0_16] : memref<8x128xf32, #tpu.memory_space<vmem>>, vector<8x128xf32>
      tpu.vector_store %arg9[%c0_15, %c0_16], %16 {strides = array<i32>} : memref<8x128xf32, #tpu.memory_space<vmem>>, vector<8x128xf32>,
    } else {
    }
    %c0 = arith.constant 0 : index
    %c0_1 = arith.constant 0 : index
    %3 = vector.load %arg4[%c0, %c0_1] : memref<128x128xf32, #tpu.memory_space<vmem>>, vector<128x128xf32>
    %c0_2 = arith.constant 0 : index
    %c0_3 = arith.constant 0 : index
    %4 = vector.load %arg5[%c0_2, %c0_3] : memref<128x128xf32, #tpu.memory_space<vmem>>, vector<128x128xf32>
    %c0_4 = arith.constant 0 : index
    %c0_5 = arith.constant 0 : index
    %5 = vector.load %arg6[%c0_4, %c0_5] : memref<128x128xf32, #tpu.memory_space<vmem>>, vector<128x128xf32>
    %6 = arith.mulf %4, %5 : vector<128x128xf32>
    %7 = arith.addf %3, %6 : vector<128x128xf32>
    %c0_6 = arith.constant 0 : index
    %c0_7 = arith.constant 0 : index
    %8 = vector.load %arg9[%c0_6, %c0_7] : memref<8x128xf32, #tpu.memory_space<vmem>>, vector<8x128xf32>
    %c0_8 = arith.constant 0 : index
    %c0_9 = arith.constant 0 : index
    %9 = vector.load %arg3[%c0_8, %c0_9] : memref<8x128xf32, #tpu.memory_space<vmem>>, vector<8x128xf32>
    %cst = arith.constant dense<0.000000e+00> : vector<8x128xf32>
    %10 = tpu.matmul %9, %7, %cst {dimension_numbers = #tpu.dot_dimension_numbers<[1], [1], [0], [0], [0, 0, 1, 0], [], []>} : vector<8x128xf32>, vector<128x128xf32>, vector<8x128xf32> -> vector<8x128xf32>
    %11 = arith.addf %8, %10 : vector<8x128xf32>
    %c0_10 = arith.constant 0 : index
    %c0_11 = arith.constant 0 : index
    %12 = vector.load %arg9[%c0_10, %c0_11] : memref<8x128xf32, #tpu.memory_space<vmem>>, vector<8x128xf32>
    tpu.vector_store %arg9[%c0_10, %c0_11], %11 {strides = array<i32>} : memref<8x128xf32, #tpu.memory_space<vmem>>, vector<8x128xf32>,
    %c0_i32_12 = arith.constant 0 : i32
    %13 = arith.cmpi eq, %arg2, %c0_i32_12 : i32
    %14 = arith.extui %13 : i1 to i32
    %c0_i32_13 = arith.constant 0 : i32
    %15 = arith.cmpi ne, %14, %c0_i32_13 : i32
    scf.if %15 {
      %c0_14 = arith.constant 0 : index
      %c0_15 = arith.constant 0 : index
      %16 = vector.load %arg9[%c0_14, %c0_15] : memref<8x128xf32, #tpu.memory_space<vmem>>, vector<8x128xf32>
      %c0_16 = arith.constant 0 : index
      %c0_17 = arith.constant 0 : index
      %17 = vector.load %arg7[%c0_16, %c0_17] : memref<1x128xf32, #tpu.memory_space<vmem>>, vector<1x128xf32>
      %18 = vector.broadcast %17 : vector<1x128xf32> to vector<8x128xf32>
      %19 = arith.addf %16, %18 : vector<8x128xf32>
      %c0_18 = arith.constant 0 : index
      %c0_19 = arith.constant 0 : index
      %20 = vector.load %arg8[%c0_18, %c0_19] : memref<8x128xf32, #tpu.memory_space<vmem>>, vector<8x128xf32>
      tpu.vector_store %arg8[%c0_18, %c0_19], %19 {strides = array<i32>} : memref<8x128xf32, #tpu.memory_space<vmem>>, vector<8x128xf32>,
    } else {
    }
    return
  }
  func.func @transform_0(%arg0: i32, %arg1: i32, %arg2: i32) -> (i32, i32) {
    %c0_i32 = arith.constant 0 : i32
    return %arg0, %arg2 : i32, i32
  }
  func.func @transform_1(%arg0: i32, %arg1: i32, %arg2: i32) -> (i32, i32) {
    %c0_i32 = arith.constant 0 : i32
    return %arg1, %arg2 : i32, i32
  }
  func.func @transform_2(%arg0: i32, %arg1: i32, %arg2: i32) -> (i32, i32) {
    %c0_i32 = arith.constant 0 : i32
    return %arg1, %arg2 : i32, i32
  }
  func.func @transform_3(%arg0: i32, %arg1: i32, %arg2: i32) -> (i32, i32) {
    %c0_i32 = arith.constant 0 : i32
    return %arg1, %arg2 : i32, i32
  }
  func.func @transform_4(%arg0: i32, %arg1: i32, %arg2: i32) -> (i32, i32) {
    %c0_i32 = arith.constant 0 : i32
    %c0_i32_0 = arith.constant 0 : i32
    return %c0_i32, %arg1 : i32, i32
  }
  func.func @transform_5(%arg0: i32, %arg1: i32, %arg2: i32) -> (i32, i32) {
    %c0_i32 = arith.constant 0 : i32
    return %arg0, %arg1 : i32, i32
  }
}

</mosaic_0001>

<bundles_post_ra>
// kernel: tpu_custom_call.1
= control target key start
LH: loop header
LB: loop body
LE: loop exit
PB: predicated region body
PF: predicated region fallthrough
CT: control target
= control target key end

     0   :  { %10 = vsyncpa [#allocation4], 0  ;;  %s411_s0 = inlined_call_operand.hbm [shape: f32[8,128], index: 0, kind: input, shape index: {}]   ;;  %s412_s1 = inlined_call_operand.hbm [shape: f32[128,128], index: 1, kind: input, shape index: {}]   ;;  %s413_s2 = inlined_call_operand.hbm [shape: f32[128,128], index: 2, kind: input, shape index: {}]   ;;  %s414_s3 = inlined_call_operand.hbm [shape: f32[128,128], index: 3, kind: input, shape index: {}]   ;;  %s415_s4 = inlined_call_operand.vmem [shape: f32[1,128], index: 4, kind: input, shape index: {}]   ;;  %s416_s5 = inlined_call_operand.hbm [shape: f32[8,128], index: 5, kind: output, shape index: {}]  }
   0x1   :  { %11 = vsyncpa [#allocation7], 0 }
   0x2   :  { %12 = vsyncpa [#allocation10], 0  ;;  %s29_s20 = sshll.u32 %s412_s1, 4  ;;  %s30_s20 = int_to_ptr.hbm [resolvable:$true] %s29_s20 }
   0x3   :  { %13 = vsyncpa [#allocation5], 0  ;;  %s356_s21 = smov [#allocation6]   ;;  %s19_s25 = sshll.u32 %s411_s0, 4  ;;  %s20_s25 = int_to_ptr.hbm [resolvable:$true] %s19_s25 }
   0x4   :  { %s31_s22 = sshll.u32 %s356_s21, 4  ;;  %s357_s26 = smov 128   ;;  %s32_s22 = int_to_ptr.vmem [resolvable:$true] %s31_s22 }
   0x5   :  { %s358_s27 = smov 8   ;;  %s359_s28 = smov [#allocation3]  }
   0x6   :  { %37 = dma.hbm_to_vmem [thread:$0]  %s30_s20, 2048, %s32_s22, [#allocation7], %s357_s26, %s357_s26, %s358_s27  }
   0x7   :  { %s21_s29 = sshll.u32 %s359_s28, 4  ;;  %s42_s7 = sshll.u32 %s413_s2, 4  ;;  %s22_s29 = int_to_ptr.vmem [resolvable:$true] %s21_s29  ;;  %s43_s7 = int_to_ptr.hbm [resolvable:$true] %s42_s7 }
   0x8   :  { %24 = dma.hbm_to_vmem [thread:$0]  %s20_s25, 128, %s22_s29, [#allocation4]  }
   0x9   :  { %s55_s9 = sshll.u32 %s414_s3, 4  ;;  %s360_s10 = smov [#allocation8]   ;;  %s56_s9 = int_to_ptr.hbm [resolvable:$true] %s55_s9 }
   0xa   :  { %s44_s11 = sshll.u32 %s360_s10, 4  ;;  %s361_s0 = smov [#allocation9]   ;;  %s45_s11 = int_to_ptr.vmem [resolvable:$true] %s44_s11 }
   0xb   :  { %50 = dma.hbm_to_vmem [thread:$0]  %s43_s7, 2048, %s45_s11, [#allocation7], %s357_s26, %s357_s26, %s358_s27  }
   0xc   :  { %s57_s12 = sshll.u32 %s361_s0, 4  ;;  %s58_s12 = int_to_ptr.vmem [resolvable:$true] %s57_s12 }
   0xd   :  { %63 = dma.hbm_to_vmem [thread:$0]  %s56_s9, 2048, %s58_s12, [#allocation10], %s357_s26, %s357_s26, %s358_s27  }
   0xe   :  { %348 = dma.done.wait [#allocation4], 128  }
   0xf   :  { %349 = vsyncadd [#allocation4], 4294967168 }
  0x10   :  { %350 = dma.done.wait [#allocation7], 4096  }
  0x11   :  { %351 = vsyncadd [#allocation7], 4294963200 }
  0x12   :  { %352 = dma.done.wait [#allocation10], 2048  }
  0x13   :  { %353 = vsyncadd [#allocation10], 4294965248  ;;  %v102_v0 = vld [vmem:[#allocation6 + $0x78] sm:$0xff]  ;;  %v117_v4 = vld [vmem:[#allocation8 + $0x70] sm:$0xff]  ;;  %s362_s13 = smov [#allocation11]   ;;  %s208_s17 = sshll.u32 %s416_s5, 4  ;;  %s209_s17 = int_to_ptr.hbm [resolvable:$true] %s208_s17 }
  0x14   :  { %v118_v1 = vld [vmem:[#allocation8 + $0x78] sm:$0xff]  ;;  %v133_v5 = vld [vmem:[#allocation9 + $0x70] sm:$0xff]  ;;  %v116_v8 = vld [vmem:[#allocation8 + $0x68] sm:$0xff]  ;;  %s206_s14 = sshll.u32 %s362_s13, 4  ;;  %s207_s14 = int_to_ptr.vmem [resolvable:$true] %s206_s14 }
  0x15   :  { %v134_v2 = vld [vmem:[#allocation9 + $0x78] sm:$0xff]  ;;  %v101_v6 = vld [vmem:[#allocation6 + $0x70] sm:$0xff]  ;;  %v149_v7 = vmul.f32 %v133_v5, %v117_v4  ;;  %v132_v9 = vld [vmem:[#allocation9 + $0x68] sm:$0xff] }
  0x16   :  { %v150_v3 = vmul.f32 %v134_v2, %v118_v1  ;;  %v148_v12 = vmul.f32 %v132_v9, %v116_v8  ;;  %v100_v13 = vld [vmem:[#allocation6 + $0x68] sm:$0xff]  ;;  %v115_v14 = vld [vmem:[#allocation8 + $0x60] sm:$0xff]  ;;  %v114_v19 = vld [vmem:[#allocation8 + $0x58] sm:$0xff] }
  0x17   :  { %v165_v11 = vadd.f32 %v149_v7, %v101_v6  ;;  %v131_v15 = vld [vmem:[#allocation9 + $0x60] sm:$0xff]  ;;  %v130_v20 = vld [vmem:[#allocation9 + $0x58] sm:$0xff]  ;;  %v113_v24 = vld [vmem:[#allocation8 + $0x50] sm:$0xff] }
  0x18   :  { %v166_v10 = vadd.f32 %v150_v3, %v102_v0  ;;  %v164_v16 = vadd.f32 %v148_v12, %v100_v13  ;;  %v147_v17 = vmul.f32 %v131_v15, %v115_v14  ;;  %v99_v18 = vld [vmem:[#allocation6 + $0x60] sm:$0xff]  ;;  %v146_v22 = vmul.f32 %v130_v20, %v114_v19  ;;  %v98_v23 = vld [vmem:[#allocation6 + $0x58] sm:$0xff]  ;;  %v129_v25 = vld [vmem:[#allocation9 + $0x50] sm:$0xff] }
  0x19   :  { %v145_v27 = vmul.f32 %v129_v25, %v113_v24  ;;  %v97_v28 = vld [vmem:[#allocation6 + $0x50] sm:$0xff]  ;;  %v112_v29 = vld [vmem:[#allocation8 + $0x48] sm:$0xff]  ;;  %v111_v34 = vld [vmem:[#allocation8 + $0x40] sm:$0xff] }
  0x1a   :  { %169 = vmatpush.xpose.msra.mxu0 %v166_v10  ;;  %v163_v21 = vadd.f32 %v147_v17, %v99_v18  ;;  %v162_v26 = vadd.f32 %v146_v22, %v98_v23  ;;  %v128_v30 = vld [vmem:[#allocation9 + $0x48] sm:$0xff]  ;;  %v127_v35 = vld [vmem:[#allocation9 + $0x40] sm:$0xff]  ;;  %v110_v39 = vld [vmem:[#allocation8 + $0x38] sm:$0xff] }
  0x1b   :  { %v161_v31 = vadd.f32 %v145_v27, %v97_v28  ;;  %v144_v32 = vmul.f32 %v128_v30, %v112_v29  ;;  %v96_v33 = vld [vmem:[#allocation6 + $0x48] sm:$0xff]  ;;  %v143_v37 = vmul.f32 %v127_v35, %v111_v34  ;;  %v95_v38 = vld [vmem:[#allocation6 + $0x40] sm:$0xff]  ;;  %v126_v40 = vld [vmem:[#allocation9 + $0x38] sm:$0xff] }
  0x1c   :  { %v142_v42 = vmul.f32 %v126_v40, %v110_v39  ;;  %v94_v43 = vld [vmem:[#allocation6 + $0x38] sm:$0xff]  ;;  %v109_v44 = vld [vmem:[#allocation8 + $0x30] sm:$0xff]  ;;  %v108_v49 = vld [vmem:[#allocation8 + $0x28] sm:$0xff] }
  0x1d   :  { %v160_v36 = vadd.f32 %v144_v32, %v96_v33  ;;  %v159_v41 = vadd.f32 %v143_v37, %v95_v38  ;;  %v125_v45 = vld [vmem:[#allocation9 + $0x30] sm:$0xff]  ;;  %v124_v50 = vld [vmem:[#allocation9 + $0x28] sm:$0xff]  ;;  %v107_v54 = vld [vmem:[#allocation8 + $0x20] sm:$0xff] }
  0x1e   :  { %170 = vmatpush.xpose.msra.mxu0 %v165_v11  ;;  %v158_v46 = vadd.f32 %v142_v42, %v94_v43  ;;  %v141_v47 = vmul.f32 %v125_v45, %v109_v44  ;;  %v93_v48 = vld [vmem:[#allocation6 + $0x30] sm:$0xff]  ;;  %v140_v52 = vmul.f32 %v124_v50, %v108_v49  ;;  %v92_v53 = vld [vmem:[#allocation6 + $0x28] sm:$0xff]  ;;  %v123_v55 = vld [vmem:[#allocation9 + $0x20] sm:$0xff] }
  0x1f   :  { %v139_v57 = vmul.f32 %v123_v55, %v107_v54  ;;  %v91_v58 = vld [vmem:[#allocation6 + $0x20] sm:$0xff]  ;;  %v106_v59 = vld [vmem:[#allocation8 + $0x18] sm:$0xff]  ;;  %v105_v0 = vld [vmem:[#allocation8 + $0x10] sm:$0xff] }
  0x20   :  { %v157_v51 = vadd.f32 %v141_v47, %v93_v48  ;;  %v156_v56 = vadd.f32 %v140_v52, %v92_v53  ;;  %v122_v60 = vld [vmem:[#allocation9 + $0x18] sm:$0xff]  ;;  %v121_v1 = vld [vmem:[#allocation9 + $0x10] sm:$0xff]  ;;  %v104_v5 = vld [vmem:[#allocation8 + $0x8] sm:$0xff] }
  0x21   :  { %v155_v61 = vadd.f32 %v139_v57, %v91_v58  ;;  %v138_v62 = vmul.f32 %v122_v60, %v106_v59  ;;  %v90_v63 = vld [vmem:[#allocation6 + $0x18] sm:$0xff]  ;;  %v137_v3 = vmul.f32 %v121_v1, %v105_v0  ;;  %v89_v4 = vld [vmem:[#allocation6 + $0x10] sm:$0xff]  ;;  %v120_v6 = vld [vmem:[#allocation9 + $0x8] sm:$0xff] }
  0x22   :  { %171 = vmatpush.xpose.msra.mxu0 %v164_v16  ;;  %v136_v8 = vmul.f32 %v120_v6, %v104_v5  ;;  %v88_v9 = vld [vmem:[#allocation6 + $0x8] sm:$0xff]  ;;  %v103_v10 = vld [vmem:[#allocation8] sm:$0xff]  ;;  %v168_v16 = vld [vmem:[#allocation3] sm:$0xff] }
  0x23   :  { %v154_v2 = vadd.f32 %v138_v62, %v90_v63  ;;  %v153_v7 = vadd.f32 %v137_v3, %v89_v4  ;;  %v119_v11 = vld [vmem:[#allocation9] sm:$0xff]  ;;  %v227_v17 = vld [vmem:[%s415_s4] ss:$0 sm:$0xff] }
  0x24   :  { %v152_v12 = vadd.f32 %v136_v8, %v88_v9  ;;  %v135_v13 = vmul.f32 %v119_v11, %v103_v10  ;;  %v87_v14 = vld [vmem:[#allocation6] sm:$0xff] }
  0x26   :  { %172 = vmatpush.xpose.msra.mxu0 %v163_v21  ;;  %v151_v15 = vadd.f32 %v135_v13, %v87_v14 }
  0x2a   :  { %173 = vmatpush.xpose.msra.mxu0 %v162_v26 }
  0x2e   :  { %174 = vmatpush.xpose.msra.mxu0 %v161_v31 }
  0x32   :  { %175 = vmatpush.xpose.msra.mxu0 %v160_v36 }
  0x36   :  { %176 = vmatpush.xpose.msra.mxu0 %v159_v41 }
  0x3a   :  { %177 = vmatpush.xpose.msra.mxu0 %v158_v46 }
  0x3e   :  { %178 = vmatpush.xpose.msra.mxu0 %v157_v51 }
  0x42   :  { %179 = vmatpush.xpose.msra.mxu0 %v156_v56 }
  0x46   :  { %180 = vmatpush.xpose.msra.mxu0 %v155_v61 }
  0x4a   :  { %181 = vmatpush.xpose.msra.mxu0 %v154_v2 }
  0x4e   :  { %182 = vmatpush.xpose.msra.mxu0 %v153_v7 }
  0x52   :  { %183 = vmatpush.xpose.msra.mxu0 %v152_v12 }
  0x56   :  { %184 = vmatpush.xpose.msra.mxu0 %v151_v15 }
  0x59   :  { %185 = vmatmul.f32.vlgmr.msra.gmra.mxu0 %v168_v16 }
  0xd6   :  { %v186_v18 = vpop.f32.mrf.mxu0 }
  0xd7   :  { %v199_v19 = vadd.f32 %v227_v17, %v186_v18 }
  0xd9   :  { %200 = vst [vmem:[#allocation11] sm:$0xff] %v199_v19 }
  0xda   :  { %211 = dma.vmem_to_hbm [thread:$0]  %s207_s14, 128, %s209_s17, [#allocation5]  }
  0xdb   :  { %354 = dma.done.wait [#allocation5], 128  }
  0xdc   :  { %355 = vsyncadd [#allocation5], 4294967168 }
  0xdd   :  { %216 = vsyncpa [#allocation4], 1 }
  0xde   :  { %217 = vsyncpa [#allocation7], 1 }
  0xdf   :  { %218 = vsyncpa [#allocation10], 1 }
  0xe0   :  { %219 = vsyncpa [#allocation5], 1 }

</bundles_post_ra>
